<compile_context>
chip_gen: v6e
topology: v6e:2x2x1
jax: 0.10.0
libtpu: 0.0.40
codegen_flags: <defaults>
</compile_context>

<pallas_src>
import jax
import jax.numpy as jnp
from jax import lax
from jax.experimental import pallas as pl
from jax.experimental.pallas import tpu as pltpu


def _embedding_loss_kernel(ti_ref, tj_ref, valid_ref,
                           a_ref, b_ref, sqr_ref, sqc_ref,
                           out_ref, acc_ref):
    # ti_ref/tj_ref/valid_ref: (2, steps) int32 in SMEM (scalar prefetch)
    # a_ref:  (TM, D) row block of pre-scaled rows (streaming dtype)
    # b_ref:  (TM, D) col block
    # sqr_ref: (N_pad, 1) f32 row squared norms, resident (constant index map)
    # sqc_ref: (1, TM)   f32 col squared norms, per-step block
    # out_ref: (1, 8, 128) f32 per-core output block
    # acc_ref: (8, TM) f32 per-core accumulator scratch
    c = pl.program_id(0)      # core-split axis ("parallel")
    s = pl.program_id(1)      # tile-pair step for this core ("arbitrary")
    tm = a_ref.shape[0]

    @pl.when(s == 0)
    def _():
        acc_ref[...] = jnp.zeros_like(acc_ref)
        out_ref[...] = jnp.zeros_like(out_ref)

    @pl.when(valid_ref[c, s] != 0)
    def _():
        # Tile Gram matrix on the MXU (bf16 in, f32 accumulate), contracting
        # the D axis of both operands directly (no explicit transpose).
        gram = lax.dot_general(
            a_ref[...], b_ref[...], (((1,), (1,)), ((), ())),
            preferred_element_type=jnp.float32)          # (TM, TM) f32

        # Row norms sliced from the resident vector; col norms from the tiny
        # per-step block.
        i0 = pl.multiple_of(ti_ref[c, s] * tm, 8)
        sqa = sqr_ref[pl.ds(i0, tm), :]                  # (TM, 1) f32
        sqb = sqc_ref[...]                               # (1, TM) f32

        # x2 = ||a_p - b_q||^2 of the pre-scaled rows (= r2 / k^2).  Clamp at
        # 0 against Gram-trick cancellation.  Padded rows carry a 1e30 norm,
        # so their x2 is huge and exp(-x2) underflows to exactly 0.
        x2 = jnp.maximum(sqa + sqb - 2.0 * gram, 0.0)

        def fold(tile):
            # (TM, TM) -> (8, TM) with pure VPU vreg adds (the reshape only
            # groups whole sublane tiles, so it is layout-preserving); the
            # cross-lane reduce is deferred to the final step.
            return jnp.sum(tile.reshape(tm // 8, 8, tm), axis=0)

        is_diag = ti_ref[c, s] == tj_ref[c, s]

        @pl.when(is_diag)
        def _():
            # Diagonal tile: count each unordered pair once (strict upper tri).
            row = lax.broadcasted_iota(jnp.int32, x2.shape, 0)
            col = lax.broadcasted_iota(jnp.int32, x2.shape, 1)
            keep = col > row
            x2s = jnp.where(keep, x2, 1.0)   # avoid 1/0 on the diagonal
            tile = jnp.where(
                keep, jnp.exp(-x2s) * pl.reciprocal(x2s, approx=True), 0.0)
            acc_ref[...] += fold(tile)

        @pl.when(jnp.logical_not(is_diag))
        def _():
            # Off-diagonal tile (ti < tj): every pair counts, no mask needed.
            acc_ref[...] += fold(jnp.exp(-x2) * pl.reciprocal(x2, approx=True))

    @pl.when(s == pl.num_programs(1) - 1)
    def _():
        # Single cross-lane reduce per core, stored lane-dense.
        out_ref[...] = jnp.full(out_ref.shape, jnp.sum(acc_ref[...]),
                                dtype=out_ref.dtype)


def embedding_loss(embedding_weight: jax.Array, k: float, *,
                   tile: int = 512,
                   block_dtype=jnp.bfloat16) -> jax.Array:
    """Pallas implementation of EmbeddingLoss.forward. Returns a scalar f32.

    `block_dtype` is the dtype the (pre-scaled) rows are streamed / fed to
    the MXU in; pass jnp.float32 for a full-precision Gram matrix.
    """
    if tile % 128 != 0 or tile < 128:
        raise ValueError("tile must be a positive multiple of 128")

    n, d = embedding_weight.shape

    # Tile size / padding.  Single tile for small N (sublane/bf16-pack
    # aligned); otherwise pad N up to a multiple of `tile`.
    if n <= tile:
        tm = ((n + 15) // 16) * 16
    else:
        tm = tile
        # TODO(synk): choose tm adaptively when n % tile is small to limit
        # padding waste.
    nt = -(-n // tm)
    n_pad = nt * tm

    # Pre-scale rows by 1/k once, round to the streaming dtype, and compute
    # per-row squared norms (in f32) of the *rounded* rows, so exact
    # duplicates still give x2 == 0 (-> inf, matching the reference).
    inv_k = 1.0 / float(k)
    ws = (embedding_weight.astype(jnp.float32) * inv_k).astype(block_dtype)
    ws_pad = jnp.pad(ws, ((0, n_pad - n), (0, 0)))
    ws_f32 = ws.astype(jnp.float32)
    sq = jnp.sum(ws_f32 * ws_f32, axis=1, keepdims=True)          # (n, 1)
    # Padded rows get a huge norm -> all their pair terms are exactly 0.
    sq_pad = jnp.pad(sq, ((0, n_pad - n), (0, 0)), constant_values=1e30)
    sq_row = sq_pad                        # (n_pad, 1), held resident
    sq_col = sq_pad.reshape(1, n_pad)      # (1, n_pad), streamed per tile

    # Upper-triangular tile pairs (tj >= ti), interleaved across the 2-core
    # axis for load balance; at most one padded (invalid) slot.
    pairs = [(i, j) for i in range(nt) for j in range(i, nt)]
    num_pairs = len(pairs)
    steps = -(-num_pairs // 2)
    padded = pairs + [(0, 0)] * (2 * steps - num_pairs)
    flags = [1] * num_pairs + [0] * (2 * steps - num_pairs)
    ti = jnp.asarray([[p[0] for p in padded[c::2]] for c in range(2)], jnp.int32)
    tj = jnp.asarray([[p[1] for p in padded[c::2]] for c in range(2)], jnp.int32)
    vd = jnp.asarray([flags[c::2] for c in range(2)], jnp.int32)

    grid_spec = pltpu.PrefetchScalarGridSpec(
        num_scalar_prefetch=3,
        grid=(2, steps),
        in_specs=[
            pl.BlockSpec((tm, d), lambda c, s, ti, tj, vd: (ti[c, s], 0)),
            pl.BlockSpec((tm, d), lambda c, s, ti, tj, vd: (tj[c, s], 0)),
            pl.BlockSpec((n_pad, 1), lambda c, s, ti, tj, vd: (0, 0)),
            pl.BlockSpec((1, tm), lambda c, s, ti, tj, vd: (0, tj[c, s])),
        ],
        out_specs=pl.BlockSpec((1, 8, 128), lambda c, s, ti, tj, vd: (c, 0, 0)),
        scratch_shapes=[pltpu.VMEM((8, tm), jnp.float32)],
    )

    item = jnp.dtype(block_dtype).itemsize
    cost = pl.CostEstimate(
        flops=2 * num_pairs * tm * tm * d + 8 * num_pairs * tm * tm,
        transcendentals=2 * num_pairs * tm * tm,   # exp + approx rcp per pair
        bytes_accessed=2 * num_pairs * tm * d * item + 8 * n_pad,
    )

    # VMEM budget: double-buffered (tm, d) row/col blocks dominate.  v5e's
    # default scoped limit is only 16 MiB; v7x has 64 MiB physical per TC, so
    # cap at 48 MiB and prefer bf16 blocks / smaller `tile` for large D.
    needed = (2 * 2 * tm * d * item          # double-buffered a/b blocks
              + 2 * 8 * tm * 4               # sq_col blocks (sublane-padded)
              + n_pad * 4 * 128              # resident sq_row (lane-padded)
              + 8 * tm * 4 + 2 * 8 * 128 * 4)
    vmem_limit = int(min(48 * 2 ** 20, max(32 * 2 ** 20, 2 * needed)))

    out = pl.pallas_call(
        _embedding_loss_kernel,
        out_shape=jax.ShapeDtypeStruct((2, 8, 128), jnp.float32),
        grid_spec=grid_spec,
        compiler_params=pltpu.CompilerParams(
            dimension_semantics=("parallel", "arbitrary"),
            vmem_limit_bytes=vmem_limit,
        ),
        cost_estimate=cost,
    )(ti, tj, vd, ws_pad, ws_pad, sq_row, sq_col)
    # Each core wrote its partial sum broadcast across its (8,128) block.
    return out[:, 0, 0].sum()


def _embedding_loss_ref(embedding_weight: jax.Array, k: float) -> jax.Array:
    """Pure-JAX reference mirroring the PyTorch code (sanity check)."""
    n = embedding_weight.shape[0]
    rs = [embedding_weight[: n - i] - embedding_weight[i:] for i in range(1, n)]
    r = jnp.concatenate(rs, axis=0)
    r2 = jnp.sum(r * r, axis=1)
    x2 = r2 / (k ** 2)
    return jnp.sum(jnp.exp(-x2) / x2)


if __name__ == "__main__":
    key = jax.random.PRNGKey(0)
    key_a, key_b = jax.random.split(key)

    # Case 1: N not a multiple of the tile -> exercises padding, the
    # triangular multi-tile enumeration, the 2-core split and the invalid-slot
    # gating (tile=128), plus the default single-big-tile path (tile=512).
    n1, d1, k1 = 300, 32, 8.0
    w1 = jax.random.normal(key_a, (n1, d1), dtype=jnp.float32)
    ref1 = jax.block_until_ready(_embedding_loss_ref(w1, k1))

    loss_multi = jax.block_until_ready(embedding_loss(w1, k1, tile=128))
    loss_single = jax.block_until_ready(embedding_loss(w1, k1))
    # bf16 MXU inputs + approx reciprocal: tolerance loosened accordingly
    # (terms are positive; row-rounding errors largely wash out in the sum).
    assert jnp.allclose(loss_multi, ref1, rtol=5e-3, atol=1e-2), (loss_multi, ref1)
    assert jnp.allclose(loss_single, ref1, rtol=5e-3, atol=1e-2), (loss_single, ref1)

    # Case 2: tiny single-tile case at the module's natural scale.
    w2 = jax.random.normal(key_b, (8, 32), dtype=jnp.float32)
    loss_s = jax.block_until_ready(embedding_loss(w2, 4.0))
    ref_s = jax.block_until_ready(_embedding_loss_ref(w2, 4.0))
    assert jnp.allclose(loss_s, ref_s, rtol=5e-3, atol=1e-4), (loss_s, ref_s)

    print("KERNEL_OK")
</pallas_src>

<mosaic_0001>
module attributes {stable_mosaic.version = 11 : i64} {
  func.func @_embedding_loss_kernel(%arg0: i32, %arg1: i32, %arg2: memref<2x3xi32, #tpu.memory_space<smem>>, %arg3: memref<2x3xi32, #tpu.memory_space<smem>>, %arg4: memref<2x3xi32, #tpu.memory_space<smem>>, %arg5: memref<128x32xbf16, #tpu.memory_space<vmem>>, %arg6: memref<128x32xbf16, #tpu.memory_space<vmem>>, %arg7: memref<384x1xf32, #tpu.memory_space<vmem>>, %arg8: memref<1x128xf32, #tpu.memory_space<vmem>>, %arg9: memref<1x8x128xf32, #tpu.memory_space<vmem>>, %arg10: memref<8x128xf32, #tpu.memory_space<vmem>>) attributes {dimension_semantics = [#tpu.dimension_semantics<parallel>, #tpu.dimension_semantics<arbitrary>], iteration_bounds = array<i64: 2, 3>, scalar_prefetch = 3 : i64, scratch_operands = 1 : i64, tpu.core_type = #tpu.core_type<tc>, window_params = [{transform_indices = @transform_0, window_bounds = array<i64: 128, 32>}, {transform_indices = @transform_1, window_bounds = array<i64: 128, 32>}, {pipeline_mode = #tpu.pipeline_mode<synchronous>, transform_indices = @transform_2, window_bounds = array<i64: 384, 1>}, {transform_indices = @transform_3, window_bounds = array<i64: 1, 128>}, {transform_indices = @transform_4, window_bounds = array<i64: 1, 8, 128>}]} {
    %c0_i32 = arith.constant 0 : i32
    %0 = arith.cmpi eq, %arg1, %c0_i32 : i32
    %1 = arith.extui %0 : i1 to i32
    %c0_i32_0 = arith.constant 0 : i32
    %2 = arith.cmpi ne, %1, %c0_i32_0 : i32
    scf.if %2 {
      %cst = arith.constant 0.000000e+00 : f32
      %12 = vector.broadcast %cst : f32 to vector<8x128xf32>
      %c0 = arith.constant 0 : index
      %c0_4 = arith.constant 0 : index
      %13 = vector.load %arg10[%c0, %c0_4] : memref<8x128xf32, #tpu.memory_space<vmem>>, vector<8x128xf32>
      tpu.vector_store %arg10[%c0, %c0_4], %12 {strides = array<i32>} : memref<8x128xf32, #tpu.memory_space<vmem>>, vector<8x128xf32>,
      %cst_5 = arith.constant 0.000000e+00 : f32
      %14 = vector.broadcast %cst_5 : f32 to vector<1x8x128xf32>
      %c0_6 = arith.constant 0 : index
      %c0_7 = arith.constant 0 : index
      %c0_8 = arith.constant 0 : index
      %15 = vector.load %arg9[%c0_6, %c0_7, %c0_8] : memref<1x8x128xf32, #tpu.memory_space<vmem>>, vector<1x8x128xf32>
      tpu.vector_store %arg9[%c0_6, %c0_7, %c0_8], %14 {strides = array<i32>} : memref<1x8x128xf32, #tpu.memory_space<vmem>>, vector<1x8x128xf32>,
    } else {
    }
    %3 = arith.index_cast %arg0 : i32 to index
    %4 = arith.index_cast %arg1 : i32 to index
    %5 = memref.load %arg4[%3, %4] : memref<2x3xi32, #tpu.memory_space<smem>>
    %c0_i32_1 = arith.constant 0 : i32
    %6 = arith.cmpi ne, %5, %c0_i32_1 : i32
    %7 = arith.extui %6 : i1 to i32
    %c0_i32_2 = arith.constant 0 : i32
    %8 = arith.cmpi ne, %7, %c0_i32_2 : i32
    scf.if %8 {
      %c0 = arith.constant 0 : index
      %c0_4 = arith.constant 0 : index
      %12 = vector.load %arg5[%c0, %c0_4] : memref<128x32xbf16, #tpu.memory_space<vmem>>, vector<128x32xbf16>
      %c0_5 = arith.constant 0 : index
      %c0_6 = arith.constant 0 : index
      %13 = vector.load %arg6[%c0_5, %c0_6] : memref<128x32xbf16, #tpu.memory_space<vmem>>, vector<128x32xbf16>
      %cst = arith.constant dense<0.000000e+00> : vector<128x128xf32>
      %14 = tpu.matmul %12, %13, %cst {dimension_numbers = #tpu.dot_dimension_numbers<[1], [1], [0], [0], [0, 0, 1, 0], [], []>} : vector<128x32xbf16>, vector<128x32xbf16>, vector<128x128xf32> -> vector<128x128xf32>
      %15 = arith.index_cast %arg0 : i32 to index
      %16 = arith.index_cast %arg1 : i32 to index
      %17 = memref.load %arg2[%15, %16] : memref<2x3xi32, #tpu.memory_space<smem>>
      %c128_i32 = arith.constant 128 : i32
      %18 = arith.muli %17, %c128_i32 : i32
      %19 = tpu.assume_multiple %18, 8 : i32
      %20 = arith.index_cast %19 : i32 to index
      %c0_7 = arith.constant 0 : index
      %21 = vector.load %arg7[%20, %c0_7] : memref<384x1xf32, #tpu.memory_space<vmem>>, vector<128x1xf32>
      %c0_8 = arith.constant 0 : index
      %c0_9 = arith.constant 0 : index
      %22 = vector.load %arg8[%c0_8, %c0_9] : memref<1x128xf32, #tpu.memory_space<vmem>>, vector<1x128xf32>
      %23 = vector.broadcast %21 : vector<128x1xf32> to vector<128x128xf32>
      %24 = vector.broadcast %22 : vector<1x128xf32> to vector<128x128xf32>
      %25 = arith.addf %23, %24 : vector<128x128xf32>
      %cst_10 = arith.constant 2.000000e+00 : f32
      %26 = vector.broadcast %cst_10 : f32 to vector<128x128xf32>
      %27 = arith.mulf %26, %14 : vector<128x128xf32>
      %28 = arith.subf %25, %27 : vector<128x128xf32>
      %cst_11 = arith.constant 0.000000e+00 : f32
      %29 = vector.broadcast %cst_11 : f32 to vector<128x128xf32>
      %30 = arith.maximumf %28, %29 : vector<128x128xf32>
      %31 = arith.index_cast %arg0 : i32 to index
      %32 = arith.index_cast %arg1 : i32 to index
      %33 = memref.load %arg2[%31, %32] : memref<2x3xi32, #tpu.memory_space<smem>>
      %34 = arith.index_cast %arg0 : i32 to index
      %35 = arith.index_cast %arg1 : i32 to index
      %36 = memref.load %arg3[%34, %35] : memref<2x3xi32, #tpu.memory_space<smem>>
      %37 = arith.cmpi eq, %33, %36 : i32
      %38 = arith.extui %37 : i1 to i32
      %c0_i32_12 = arith.constant 0 : i32
      %39 = arith.cmpi ne, %38, %c0_i32_12 : i32
      scf.if %39 {
        %43 = tpu.iota {dimensions = array<i32: 0>} : vector<128x128xi32>
        %44 = tpu.iota {dimensions = array<i32: 1>} : vector<128x128xi32>
        %45 = arith.cmpi sgt, %44, %43 : vector<128x128xi32>
        %cst_14 = arith.constant 1.000000e+00 : f32
        %46 = vector.broadcast %cst_14 : f32 to vector<128x128xf32>
        %47 = arith.select %45, %30, %46 : vector<128x128xi1>, vector<128x128xf32>
        %cst_15 = arith.constant 0.000000e+00 : f32
        %48 = vector.broadcast %cst_15 : f32 to vector<128x128xf32>
        %49 = arith.subf %48, %47 : vector<128x128xf32>
        %50 = math.exp %49 : vector<128x128xf32>
        %51 = tpu.reciprocal %47 {approx = true} : vector<128x128xf32> -> vector<128x128xf32>
        %52 = arith.mulf %50, %51 : vector<128x128xf32>
        %cst_16 = arith.constant 0.000000e+00 : f32
        %53 = vector.broadcast %cst_16 : f32 to vector<128x128xf32>
        %54 = arith.select %45, %52, %53 : vector<128x128xi1>, vector<128x128xf32>
        %c0_17 = arith.constant 0 : index
        %c0_18 = arith.constant 0 : index
        %55 = vector.load %arg10[%c0_17, %c0_18] : memref<8x128xf32, #tpu.memory_space<vmem>>, vector<8x128xf32>
        %56 = vector.shape_cast %54 : vector<128x128xf32> to vector<16x8x128xf32>
        %cst_19 = arith.constant dense<0.000000e+00> : vector<8x128xf32>
        %57 = vector.multi_reduction <add>, %56, %cst_19 [0] : vector<16x8x128xf32> to vector<8x128xf32>
        %58 = arith.addf %55, %57 : vector<8x128xf32>
        %c0_20 = arith.constant 0 : index
        %c0_21 = arith.constant 0 : index
        %59 = vector.load %arg10[%c0_20, %c0_21] : memref<8x128xf32, #tpu.memory_space<vmem>>, vector<8x128xf32>
        tpu.vector_store %arg10[%c0_20, %c0_21], %58 {strides = array<i32>} : memref<8x128xf32, #tpu.memory_space<vmem>>, vector<8x128xf32>,
      } else {
      }
      %true = arith.constant true
      %40 = arith.xori %37, %true : i1
      %41 = arith.extui %40 : i1 to i32
      %c0_i32_13 = arith.constant 0 : i32
      %42 = arith.cmpi ne, %41, %c0_i32_13 : i32
      scf.if %42 {
        %c0_14 = arith.constant 0 : index
        %c0_15 = arith.constant 0 : index
        %43 = vector.load %arg10[%c0_14, %c0_15] : memref<8x128xf32, #tpu.memory_space<vmem>>, vector<8x128xf32>
        %cst_16 = arith.constant 0.000000e+00 : f32
        %44 = vector.broadcast %cst_16 : f32 to vector<128x128xf32>
        %45 = arith.subf %44, %30 : vector<128x128xf32>
        %46 = math.exp %45 : vector<128x128xf32>
        %47 = tpu.reciprocal %30 {approx = true} : vector<128x128xf32> -> vector<128x128xf32>
        %48 = arith.mulf %46, %47 : vector<128x128xf32>
        %49 = vector.shape_cast %48 : vector<128x128xf32> to vector<16x8x128xf32>
        %cst_17 = arith.constant dense<0.000000e+00> : vector<8x128xf32>
        %50 = vector.multi_reduction <add>, %49, %cst_17 [0] : vector<16x8x128xf32> to vector<8x128xf32>
        %51 = arith.addf %43, %50 : vector<8x128xf32>
        %c0_18 = arith.constant 0 : index
        %c0_19 = arith.constant 0 : index
        %52 = vector.load %arg10[%c0_18, %c0_19] : memref<8x128xf32, #tpu.memory_space<vmem>>, vector<8x128xf32>
        tpu.vector_store %arg10[%c0_18, %c0_19], %51 {strides = array<i32>} : memref<8x128xf32, #tpu.memory_space<vmem>>, vector<8x128xf32>,
      } else {
      }
    } else {
    }
    %c2_i32 = arith.constant 2 : i32
    %9 = arith.cmpi eq, %arg1, %c2_i32 : i32
    %10 = arith.extui %9 : i1 to i32
    %c0_i32_3 = arith.constant 0 : i32
    %11 = arith.cmpi ne, %10, %c0_i32_3 : i32
    scf.if %11 {
      %c0 = arith.constant 0 : index
      %c0_4 = arith.constant 0 : index
      %12 = vector.load %arg10[%c0, %c0_4] : memref<8x128xf32, #tpu.memory_space<vmem>>, vector<8x128xf32>
      %13 = vector.shape_cast %12 : vector<8x128xf32> to vector<1x8x128xf32>
      %cst = arith.constant dense<0.000000e+00> : vector<1xf32>
      %14 = vector.multi_reduction <add>, %13, %cst [1, 2] : vector<1x8x128xf32> to vector<1xf32>
      %15 = vector.shape_cast %14 : vector<1xf32> to vector<1x1x1xf32>
      %16 = vector.extract %15[0, 0, 0] : f32 from vector<1x1x1xf32>
      %17 = vector.broadcast %16 : f32 to vector<1x8x128xf32>
      %c0_5 = arith.constant 0 : index
      %c0_6 = arith.constant 0 : index
      %c0_7 = arith.constant 0 : index
      %18 = vector.load %arg9[%c0_5, %c0_6, %c0_7] : memref<1x8x128xf32, #tpu.memory_space<vmem>>, vector<1x8x128xf32>
      tpu.vector_store %arg9[%c0_5, %c0_6, %c0_7], %17 {strides = array<i32>} : memref<1x8x128xf32, #tpu.memory_space<vmem>>, vector<1x8x128xf32>,
    } else {
    }
    return
  }
  func.func @transform_0(%arg0: i32, %arg1: i32, %arg2: memref<2x3xi32, #tpu.memory_space<smem>>, %arg3: memref<2x3xi32, #tpu.memory_space<smem>>, %arg4: memref<2x3xi32, #tpu.memory_space<smem>>) -> (i32, i32) {
    %0 = arith.index_cast %arg0 : i32 to index
    %1 = arith.index_cast %arg1 : i32 to index
    %2 = memref.load %arg2[%0, %1] : memref<2x3xi32, #tpu.memory_space<smem>>
    %c0_i32 = arith.constant 0 : i32
    %c0_i32_0 = arith.constant 0 : i32
    return %2, %c0_i32 : i32, i32
  }
  func.func @transform_1(%arg0: i32, %arg1: i32, %arg2: memref<2x3xi32, #tpu.memory_space<smem>>, %arg3: memref<2x3xi32, #tpu.memory_space<smem>>, %arg4: memref<2x3xi32, #tpu.memory_space<smem>>) -> (i32, i32) {
    %0 = arith.index_cast %arg0 : i32 to index
    %1 = arith.index_cast %arg1 : i32 to index
    %2 = memref.load %arg3[%0, %1] : memref<2x3xi32, #tpu.memory_space<smem>>
    %c0_i32 = arith.constant 0 : i32
    %c0_i32_0 = arith.constant 0 : i32
    return %2, %c0_i32 : i32, i32
  }
  func.func @transform_2(%arg0: i32, %arg1: i32, %arg2: memref<2x3xi32, #tpu.memory_space<smem>>, %arg3: memref<2x3xi32, #tpu.memory_space<smem>>, %arg4: memref<2x3xi32, #tpu.memory_space<smem>>) -> (i32, i32) {
    %c0_i32 = arith.constant 0 : i32
    %c0_i32_0 = arith.constant 0 : i32
    %c0_i32_1 = arith.constant 0 : i32
    return %c0_i32, %c0_i32_0 : i32, i32
  }
  func.func @transform_3(%arg0: i32, %arg1: i32, %arg2: memref<2x3xi32, #tpu.memory_space<smem>>, %arg3: memref<2x3xi32, #tpu.memory_space<smem>>, %arg4: memref<2x3xi32, #tpu.memory_space<smem>>) -> (i32, i32) {
    %0 = arith.index_cast %arg0 : i32 to index
    %1 = arith.index_cast %arg1 : i32 to index
    %2 = memref.load %arg3[%0, %1] : memref<2x3xi32, #tpu.memory_space<smem>>
    %c0_i32 = arith.constant 0 : i32
    %c0_i32_0 = arith.constant 0 : i32
    return %c0_i32, %2 : i32, i32
  }
  func.func @transform_4(%arg0: i32, %arg1: i32, %arg2: memref<2x3xi32, #tpu.memory_space<smem>>, %arg3: memref<2x3xi32, #tpu.memory_space<smem>>, %arg4: memref<2x3xi32, #tpu.memory_space<smem>>) -> (i32, i32, i32) {
    %c0_i32 = arith.constant 0 : i32
    %c0_i32_0 = arith.constant 0 : i32
    %c0_i32_1 = arith.constant 0 : i32
    return %arg0, %c0_i32, %c0_i32_0 : i32, i32, i32
  }
}

</mosaic_0001>

<bundles_post_ra>
// kernel: tpu_custom_call.1
= control target key start
LH: loop header
LB: loop body
LE: loop exit
PB: predicated region body
PF: predicated region fallthrough
CT: control target
= control target key end

     0   :  { %s2332_s0 = inlined_call_operand.vmem [shape: s32[2,3], index: 0, kind: input, shape index: {}]   ;;  %s2333_s3 = inlined_call_operand.vmem [shape: bf16[384,32], index: 3, kind: input, shape index: {}]   ;;  %s2334_s4 = inlined_call_operand.vmem [shape: bf16[384,32], index: 4, kind: input, shape index: {}]   ;;  %s2335_s5 = inlined_call_operand.vmem [shape: f32[384,1], index: 5, kind: input, shape index: {}]   ;;  %s2336_s6 = inlined_call_operand.vmem [shape: f32[1,384], index: 6, kind: input, shape index: {}]   ;;  %s2337_s7 = inlined_call_operand.hbm [shape: f32[2,8,128], index: 7, kind: output, shape index: {}]   ;;  %s2338_s1 = inlined_call_operand.vmem [shape: s32[2,3], index: 1, kind: input, shape index: {}]   ;;  %s2339_s2 = inlined_call_operand.vmem [shape: s32[2,3], index: 2, kind: input, shape index: {}]  }
   0x1   :  { %s12_s26 = sshll.u32 %s2332_s0, 4  ;;  %s16_s29 = sshll.u32 %s2338_s1, 4  ;;  %s13_s26 = int_to_ptr.vmem [resolvable:$true] %s12_s26  ;;  %s17_s29 = int_to_ptr.vmem [resolvable:$true] %s16_s29 }
   0x2   :  { %s1632_s30 = scalar_lea.vmem %s13_s26, 32  ;;  %p1637_p1 = scmp.lt.s32.totalorder %s13_s26, %s13_s26 }
   0x3   :  { %p1633_p0 = scmp.ne.s32.totalorder %s13_s26, %s1632_s30  ;;  %p1638_p2 = scmp.lt.s32.totalorder %s1632_s30, %s1632_s30 }
   0x5   :  { %p1639_p3 = por %p1638_p2, %p1637_p1 }
   0x7   :  { %p1640_p4 = pnand %p1639_p3, %p1633_p0 }
   0x9   :  { %1643 = shalt.err (!%p1640_p4)  }
   0xa   :  { %s1764_s8 = smov [#allocation4]   ;;  %s1644_s9 = scalar_lea.vmem %s17_s29, 32 }
   0xb   :  { %15 = dma.vmem_to_smem %s13_s26, 32, %s1764_s8, [#allocation3] }
   0xc   :  { %p1645_p5 = scmp.ne.s32.totalorder %s17_s29, %s1644_s9  ;;  %p1649_p6 = scmp.lt.s32.totalorder %s17_s29, %s17_s29 }
   0xd   :  { %p1650_p7 = scmp.lt.s32.totalorder %s1644_s9, %s1644_s9 }
   0xf   :  { %p1651_p8 = por %p1650_p7, %p1649_p6 }
  0x11   :  { %p1652_p9 = pnand %p1651_p8, %p1645_p5 }
  0x13   :  { %1655 = shalt.err (!%p1652_p9)  }
  0x14   :  { %s1765_s0 = smov [#allocation5]   ;;  %s20_s11 = sshll.u32 %s2339_s2, 4  ;;  %s21_s11 = int_to_ptr.vmem [resolvable:$true] %s20_s11 }
  0x15   :  { %19 = dma.vmem_to_smem %s17_s29, 32, %s1765_s0, [#allocation3] }
  0x16   :  { %s1656_s12 = scalar_lea.vmem %s21_s11, 32  ;;  %p1661_p11 = scmp.lt.s32.totalorder %s21_s11, %s21_s11 }
  0x17   :  { %p1657_p10 = scmp.ne.s32.totalorder %s21_s11, %s1656_s12  ;;  %p1662_p12 = scmp.lt.s32.totalorder %s1656_s12, %s1656_s12 }
  0x19   :  { %p1663_p13 = por %p1662_p12, %p1661_p11 }
  0x1b   :  { %p1664_p0 = pnand %p1663_p13, %p1657_p10 }
  0x1d   :  { %1667 = shalt.err (!%p1664_p0)  }
  0x1e   :  { %s1766_s13 = smov [#allocation6]  }
  0x1f   :  { %23 = dma.vmem_to_smem %s21_s11, 32, %s1766_s13, [#allocation3] }
  0x20   :  { %1726 = dma.done.wait [#allocation3], 96 }
  0x21   :  { %1727 = vsyncadd [#allocation3], 4294967200 }
  0x22   :  { %25 = sfence }
  0x23   :  { %26 = vsyncpa [#allocation8], 0 }
  0x24   :  { %28 = vsyncpa [#allocation8 + $0x1], 0  ;;  %s1819_s14 = smov 0   ;;  %s1821_s15 = smov 0  }
  0x25   :  { %s1823_s2 = smov 0   ;;  %s1825_s16 = smov 0  }
  0x26   :  { %s1827_s17 = smov 0   ;;  %s1829_s18 = smov 0  }
  0x27   :  { %s1831_s19 = smov 0   ;;  %s1833_s20 = smov 0  }
  0x28 LB: > { %2344 = sst [smem:[#allocation11_spill]] %s1754_s18  ;;  %s1273_s21 = sadd.s32 4294967295, %s1762_s20   ;;  %s1762_s20 = sphi %s1833_s20, %s34_s20   ;;  %s1758_s19 = sphi %s1831_s19, %s2354_s19   ;;  %s1754_s18 = sphi %s1829_s18, %s2353_s18   ;;  %s1750_s17 = sphi %s1827_s17, %s2352_s17   ;;  %s1746_s16 = sphi %s1825_s16, %s2351_s16   ;;  %s1742_s2 = sphi %s1823_s2, %s2357_s2   ;;  %s1738_s15 = sphi %s1821_s15, %s2356_s15   ;;  %s1734_s14 = sphi %s1819_s14, %s2355_s14  }
  0x29   : > { %2345 = sst [smem:[#allocation12_spill]] %s1758_s19  ;;  %s1274_s22 = sadd.s32 4294967294, %s1762_s20  }
  0x2a   : > { %s43_s23 = sadd.s32 1, %s1754_s18  ;;  %s46_s24 = sadd.s32 1, %s1758_s19 }
  0x2b   : > { %p44_p1 = scmp.ge.s32.totalorder %s43_s23, 3  ;;  %p210_p2 = scmp.ne.s32.totalorder %s1742_s2, %s1738_s15 }
  0x2c   : > { %p211_p3 = scmp.eq.s32.totalorder %s1273_s21, 5  ;;  %p216_p5 = scmp.ne.s32.totalorder %s1738_s15, %s1734_s14 }
  0x2d   : > { %s2359_s23 = smov (%p44_p1, %s43_s23), 0  ;;  %s2361_s24 = smov (!%p44_p1, %s46_s24), %s1758_s19 }
  0x2e   : > { %2346 = sst [smem:[#allocation13_spill]] %s2359_s23  ;;  %p1868_p4 = por %p211_p3, %p210_p2 }
  0x2f   : > { %p48_p6 = scmp.ge.s32.totalorder %s2361_s24, 2  ;;  %p217_p7 = scmp.eq.s32.totalorder %s1274_s22, 5 }
  0x30   : > { %p1283_p8 = scmp.ge.s32.totalorder %s1762_s20, 1  ;;  %p310_p9 = scmp.lt.s32.totalorder %s1762_s20, 7 }
  0x31   : > { %s2363_s24 = smov (%p48_p6, %s2361_s24), 0  ;;  %p1878_p10 = por %p217_p7, %p216_p5 }
  0x32   : > { %2348 = sst [smem:[#allocation14_spill]] %s2363_s24  ;;  %p311_p11 = pnand %p1283_p8, %p310_p9 }
  0x33   : > { %s197_s27 = ssub.s32 %s1758_s19, %s2363_s24  ;;  %s200_s28 = sadd.s32 1, %s1742_s2 }
  0x34   : > { %p198_p12 = scmp.eq.s32.totalorder %s197_s27, 0  ;;  %314 = sbr.rel (%p311_p11) target bundleno = 735 (0x2df), region = 36 }
  0x35   : > { %s2340_s30 = sand.u32 (!%p311_p11), 1, %s1738_s15   ;;  %s368_s8 = sshra.s32 (!%p311_p11), %s1746_s16, 7 }
  0x36   : > { %s1886_s29 = scalar_select %p198_p12, %s1742_s2, %s200_s28  }
  0x37   : > { %s1284_s9 = sshll.u32 (!%p311_p11), %s2340_s30, 3  ;;  %s370_s0 = sadd.s32 (!%p311_p11), %s1750_s17, %s368_s8 }
  0x38   : > { %s1285_s1 = sshll.u32 (!%p311_p11), %s370_s0, 7  ;;  %s373_s10 = sand.u32 (!%p311_p11), 127, %s1746_s16 }
  0x39   : > { %s1894_s11 = sadd.s32 %s1285_s1, %s373_s10  ;;  %s1915_s18 = scalar_lea.vmem [#allocation7], %s1284_s9 }
  0x3a   : > { %s375_s12 = sld [smem:[#allocation4 + %s1894_s11]]  ;;  %p1292_p2 = scmp.ne.s32.totalorder %s1746_s16, 0 }
  0x3b   : > { %s397_s13 = sld [smem:[#allocation5 + %s1894_s11]] }
  0x3c   : > { %s419_s21 = sld [smem:[#allocation5 + %s1894_s11]] }
  0x40   : > { %s1286_s22 = sshll.u32 %s375_s12, 4 }
  0x41   : > { %p377_p13 = scmp.lt.s32.totalorder %s1286_s22, 47  ;;  %s1289_s27 = sshll.u32 %s397_s13, 4 }
  0x42   : > { %p399_p0 = scmp.lt.s32.totalorder %s1289_s27, 47  ;;  %p420_p1 = scmp.lt.s32.totalorder %s419_s21, 2 }
  0x43   : > { %s2365_s22 = smov (!%p377_p13, %s1286_s22), 47  ;;  %435 = sbr.rel (%p1292_p2) target bundleno = 74 (0x4a), region = 40 }
  0x44   : > { %s2367_s27 = smov (!%p399_p0, %s1289_s27), 47  ;;  %s1287_s28 = sshll.u32 %s2365_s22, 2 }
  0x45   : > { %s1902_s0 = scalar_lea.vmem %s2333_s3, %s1287_s28  ;;  %s1290_s1 = sshll.u32 %s2367_s27, 2 }
  0x46   : > { %s1907_s23 = scalar_lea.vmem %s2334_s4, %s1290_s1  ;;  %s2369_s21 = smov (!%p420_p1, %s419_s21), 2 }
  0x47   : > { %s422_s19 = scalar_lea.vmem %s2336_s6, %s2369_s21 }
  0x48   : > { %v1767_v0 = vmov 0.0  }
  0x49   : > { %436 = vst [vmem:[#allocation2] sm:$0xff] %v1767_v0  ;;  %437 = vst [vmem:[%s1915_s18] sm:$0xff] %v1767_v0 }
  0x4a PF: > { %s445_s24 = sld [smem:[#allocation6 + %s1894_s11]] }
  0x50   : > { %p1294_p3 = scmp.eq.s32.totalorder %s445_s24, 0 }
  0x51   : > { %s1933_s30 = sld [smem:[#allocation4 + %s1894_s11]] (!%p1294_p3) }
  0x52   : > { %449 = sbr.rel (%p1294_p3) target bundleno = 501 (0x1f5), region = 44 }
  0x57   : > { %v1488_v1 = vld [vmem:[%s1907_s23 + $0x38] sm:$0xff]   ;;  %vm562_vm0 = vcmask 261120   ;;  %v1489_v2 = vld [vmem:[%s1907_s23 + $0x30] sm:$0xff]   ;;  %v1768_v4 = vmov 0   ;;  %v1490_v5 = vld [vmem:[%s1907_s23 + $0x28] sm:$0xff]   ;;  %s1319_s9 = sshll.u32 %s1933_s30, 7 }
  0x58   : > { %1392 = vmatprep.subr.msk.bf16.mxu0 %vm562_vm0, %v1488_v1  ;;  %1393 = vmatprep.subr.msk.bf16.mxu1 %vm562_vm0, %v1488_v1  ;;  %v609_v3 = vsel %vm562_vm0, %v1488_v1, 0  ;;  %v606_v6 = vsel %vm562_vm0, %v1489_v2, 0  ;;  %v1496_v7 = vld [vmem:[%s1902_s0] sm:$0xff]   ;;  %v603_v9 = vsel %vm562_vm0, %v1490_v5, 0  ;;  %s1944_s28 = scalar_lea.vmem %s2335_s5, %s1319_s9  ;;  %v1492_v16 = vld [vmem:[%s1907_s23 + $0x18] sm:$0xff]   ;;  %v1493_v22 = vld [vmem:[%s1907_s23 + $0x10] sm:$0xff]  }
  0x59   : > { %1345 = vmatpush3.bf16.xpose.msra.mxu0 %v609_v3  ;;  %1384 = vmatpush3.bf16.xpose.msra.mxu1 %v609_v3  ;;  %v1497_v8 = vld [vmem:[%s1902_s0 + $0x20] sm:$0xff]   ;;  %v713_v11 = vld [vmem:[%s1944_s28 + $0x10] sm:$0xff]  ;;  %v714_v13 = vld [vmem:[%s1944_s28 + $0x18] sm:$0xff]  ;;  %v597_v21 = vsel %vm562_vm0, %v1492_v16, 0  ;;  %v594_v27 = vsel %vm562_vm0, %v1493_v22, 0 }
  0x5a   : > { %1394 = vmatprep.subr.msk.bf16.mxu0 %vm562_vm0, %v1489_v2  ;;  %1395 = vmatprep.subr.msk.bf16.mxu1 %vm562_vm0, %v1489_v2  ;;  %v1491_v10 = vld [vmem:[%s1907_s23 + $0x20] sm:$0xff]   ;;  %v712_v14 = vld [vmem:[%s1944_s28 + $0x8] sm:$0xff]  ;;  %v718_v19 = vld [vmem:[%s1944_s28 + $0x38] sm:$0xff] }
  0x5b   : > { %1487 = vset.pattern.permute.xlu1 %v1768_v4  ;;  %1486 = vset.pattern.permute.xlu0 %v1768_v4  ;;  %v711_v12 = vld [vmem:[%s1944_s28] sm:$0xff]  ;;  %v600_v15 = vsel %vm562_vm0, %v1491_v10, 0  ;;  %v716_v17 = vld [vmem:[%s1944_s28 + $0x28] sm:$0xff]  ;;  %v717_v20 = vld [vmem:[%s1944_s28 + $0x30] sm:$0xff] }
  0x5c   : > { %1360 = vmatprep.mubr.msk.bf16.mxu0 %vm562_vm0, %v1496_v7  ;;  %1368 = vmatprep.mubr.msk.bf16.mxu1 %vm562_vm0, %v1497_v8  ;;  %v715_v18 = vld [vmem:[%s1944_s28 + $0x20] sm:$0xff]  ;;  %v720_v23 = vld [vmem:[%s1944_s28 + $0x48] sm:$0xff]  ;;  %v722_v25 = vld [vmem:[%s1944_s28 + $0x58] sm:$0xff] }
  0x5d   : > { %740 = vperm.xlu1 %1487, %v713_v11   ;;  %730 = vperm.xlu0 %1486, %v711_v12   ;;  %v719_v24 = vld [vmem:[%s1944_s28 + $0x40] sm:$0xff]  ;;  %v721_v26 = vld [vmem:[%s1944_s28 + $0x50] sm:$0xff]  ;;  %v1494_v28 = vld [vmem:[%s1907_s23 + $0x8] sm:$0xff]  }
  0x5e   : > { %v724_v29 = vld [vmem:[%s1944_s28 + $0x68] sm:$0xff]  ;;  %v723_v30 = vld [vmem:[%s1944_s28 + $0x60] sm:$0xff]  ;;  %v726_v31 = vld [vmem:[%s1944_s28 + $0x78] sm:$0xff]  ;;  %v591_v33 = vsel %vm562_vm0, %v1494_v28, 0 }
  0x5f   : > { %v725_v32 = vld [vmem:[%s1944_s28 + $0x70] sm:$0xff]  ;;  %v1495_v34 = vld [vmem:[%s1907_s23] sm:$0xff]   ;;  %v1498_v36 = vld [vmem:[%s1902_s0 + $0x8] sm:$0xff]   ;;  %s1994_s23 = sld [smem:[#allocation5 + %s1894_s11]] }
  0x60   : > { %v588_v35 = vsel %vm562_vm0, %v1495_v34, 0  ;;  %v1499_v37 = vld [vmem:[%s1902_s0 + $0x28] sm:$0xff]   ;;  %v1500_v38 = vld [vmem:[%s1902_s0 + $0x10] sm:$0xff]   ;;  %v1502_v40 = vld [vmem:[%s1902_s0 + $0x18] sm:$0xff]  }
  0x61   : > { %1347 = vmatpush3.bf16.xpose.msra.mxu0 %v606_v6  ;;  %1385 = vmatpush3.bf16.xpose.msra.mxu1 %v606_v6  ;;  %v1501_v39 = vld [vmem:[%s1902_s0 + $0x30] sm:$0xff]   ;;  %v1503_v41 = vld [vmem:[%s1902_s0 + $0x38] sm:$0xff]   ;;  %v2003_v54 = vld [vmem:[%s422_s19] ss:$0 sm:$0xff] }
  0x62   : > { %1396 = vmatprep.subr.msk.bf16.mxu0 %vm562_vm0, %v1490_v5  ;;  %1397 = vmatprep.subr.msk.bf16.mxu1 %vm562_vm0, %v1490_v5 }
  0x63   : > { %745 = vperm.xlu1 %1487, %v714_v13   ;;  %735 = vperm.xlu0 %1486, %v712_v14  }
  0x65   : > { %p1321_p5 = scmp.ne.s32.totalorder %s1933_s30, %s1994_s23 }
  0x67   : > { %755 = vperm.xlu1 %1487, %v716_v17   ;;  %750 = vperm.xlu0 %1486, %v715_v18  }
  0x69   : > { %1349 = vmatpush3.bf16.xpose.msra.mxu0 %v603_v9  ;;  %1386 = vmatpush3.bf16.xpose.msra.mxu1 %v603_v9 }
  0x6a   : > { %1398 = vmatprep.subr.msk.bf16.mxu0 %vm562_vm0, %v1491_v10  ;;  %1399 = vmatprep.subr.msk.bf16.mxu1 %vm562_vm0, %v1491_v10 }
  0x6b   : > { %765 = vperm.xlu1 %1487, %v718_v19   ;;  %760 = vperm.xlu0 %1486, %v717_v20  }
  0x6f   : > { %775 = vperm.xlu1 %1487, %v720_v23   ;;  %770 = vperm.xlu0 %1486, %v719_v24  }
  0x71   : > { %1351 = vmatpush3.bf16.xpose.msra.mxu0 %v600_v15  ;;  %1387 = vmatpush3.bf16.xpose.msra.mxu1 %v600_v15 }
  0x72   : > { %1400 = vmatprep.subr.msk.bf16.mxu0 %vm562_vm0, %v1492_v16  ;;  %1401 = vmatprep.subr.msk.bf16.mxu1 %vm562_vm0, %v1492_v16 }
  0x73   : > { %785 = vperm.xlu1 %1487, %v722_v25   ;;  %780 = vperm.xlu0 %1486, %v721_v26  }
  0x77   : > { %795 = vperm.xlu1 %1487, %v724_v29   ;;  %790 = vperm.xlu0 %1486, %v723_v30  }
  0x79   : > { %1353 = vmatpush3.bf16.xpose.msra.mxu0 %v597_v21  ;;  %1388 = vmatpush3.bf16.xpose.msra.mxu1 %v597_v21 }
  0x7a   : > { %1402 = vmatprep.subr.msk.bf16.mxu0 %vm562_vm0, %v1493_v22  ;;  %1403 = vmatprep.subr.msk.bf16.mxu1 %vm562_vm0, %v1493_v22 }
  0x7b   : > { %805 = vperm.xlu1 %1487, %v726_v31   ;;  %800 = vperm.xlu0 %1486, %v725_v32  }
  0x81   : > { %1355 = vmatpush3.bf16.xpose.msra.mxu0 %v594_v27  ;;  %1389 = vmatpush3.bf16.xpose.msra.mxu1 %v594_v27 }
  0x82   : > { %1404 = vmatprep.subr.msk.bf16.mxu0 %vm562_vm0, %v1494_v28  ;;  %1405 = vmatprep.subr.msk.bf16.mxu1 %vm562_vm0, %v1494_v28 }
  0x89   : > { %1357 = vmatpush3.bf16.xpose.msra.mxu0 %v591_v33  ;;  %1390 = vmatpush3.bf16.xpose.msra.mxu1 %v591_v33 }
  0x8a   : > { %1406 = vmatprep.subr.msk.bf16.mxu0 %vm562_vm0, %v1495_v34  ;;  %1407 = vmatprep.subr.msk.bf16.mxu1 %vm562_vm0, %v1495_v34 }
  0x91   : > { %1359 = vmatpush3.bf16.xpose.msra.mxu0 %v588_v35  ;;  %1391 = vmatpush3.bf16.xpose.msra.mxu1 %v588_v35 }
  0x98   : > { %1361 = vmatmul.mubr.msk.bf16.vlgmr.msra.gmra.mxu0 %vm562_vm0, %v1498_v36  ;;  %1369 = vmatmul.mubr.msk.bf16.vlgmr.msra.gmra.mxu1 %vm562_vm0, %v1499_v37 }
  0x99   : > { %1364 = vmatprep.mubr.msk.bf16.mxu0 %vm562_vm0, %v1500_v38  ;;  %1372 = vmatprep.mubr.msk.bf16.mxu1 %vm562_vm0, %v1501_v39 }
  0xa0   : > { %1365 = vmatmul.mubr.msk.bf16.gmra.mxu0 %vm562_vm0, %v1502_v40  ;;  %1373 = vmatmul.mubr.msk.bf16.gmra.mxu1 %vm562_vm0, %v1503_v41 }
  0xd8   : > { %v731_v42 = vpop.permute.xlu0 %730  ;;  %v741_v43 = vpop.permute.xlu1 %740 }
  0xd9   : > { %v816_v58 = vadd.f32 %v2003_v54, %v741_v43  ;;  %v814_v62 = vadd.f32 %v2003_v54, %v731_v42 }
  0xde   : > { %v736_v44 = vpop.permute.xlu0 %735  ;;  %v746_v45 = vpop.permute.xlu1 %745 }
  0xdf   : > { %v817_v7 = vadd.f32 %v2003_v54, %v746_v45  ;;  %v815_v8 = vadd.f32 %v2003_v54, %v736_v44 }
  0xe2   : > { %v751_v46 = vpop.permute.xlu0 %750  ;;  %v1996_v47 = vpop.permute.xlu1 %755 }
  0xe3   : > { %v818_v37 = vadd.f32 %v2003_v54, %v751_v46 }
  0xe6   : > { %v761_v48 = vpop.permute.xlu0 %760  ;;  %v766_v49 = vpop.permute.xlu1 %765 }
  0xe7   : > { %v820_v26 = vadd.f32 %v2003_v54, %v761_v48  ;;  %v821_v38 = vadd.f32 %v2003_v54, %v766_v49 }
  0xea   : > { %v771_v50 = vpop.permute.xlu0 %770  ;;  %v776_v51 = vpop.permute.xlu1 %775 }
  0xeb   : > { %v822_v63 = vadd.f32 %v2003_v54, %v771_v50  ;;  %v823_v16 = vadd.f32 %v2003_v54, %v776_v51 }
  0xee   : > { %v781_v52 = vpop.permute.xlu0 %780  ;;  %v786_v53 = vpop.permute.xlu1 %785 }
  0xef   : > { %v824_v59 = vadd.f32 %v2003_v54, %v781_v52  ;;  %v825_v17 = vadd.f32 %v2003_v54, %v786_v53 }
  0xf2   : > { %v791_v55 = vpop.permute.xlu0 %790  ;;  %v796_v2 = vpop.permute.xlu1 %795 }
  0xf3   : > { %v826_v50 = vadd.f32 %v2003_v54, %v791_v55 }
  0xf6   : > { %v801_v11 = vpop.permute.xlu0 %800  ;;  %v806_v32 = vpop.permute.xlu1 %805 }
  0xf7   : > { %v828_v27 = vadd.f32 %v2003_v54, %v801_v11  ;;  %v829_v51 = vadd.f32 %v2003_v54, %v806_v32 }
 0x158   : > { %v1362_v56 = vpop.f32.mrf.mxu0  ;;  %v1370_v57 = vpop.f32.mrf.mxu1 }
 0x159   : > { %v832_v60 = vmul.f32 2.0, %v1362_v56  ;;  %v840_v61 = vmul.f32 2.0, %v1370_v57 }
 0x15a   : > { %v645_v0 = vpop.f32.mrf.mxu0  ;;  %v677_v1 = vpop.f32.mrf.mxu1 }
 0x15b   : > { %v848_v3 = vsub.f32 %v816_v58, %v832_v60  ;;  %v856_v4 = vsub.f32 %v824_v59, %v840_v61  ;;  %v830_v5 = vmul.f32 2.0, %v645_v0  ;;  %v838_v6 = vmul.f32 2.0, %v677_v1 }
 0x15c   : > { %v1363_v9 = vpop.f32.mrf.mxu0  ;;  %v1371_v10 = vpop.f32.mrf.mxu1  ;;  %v819_v60 = vadd.f32 %v2003_v54, %v1996_v47  ;;  %v827_v61 = vadd.f32 %v2003_v54, %v796_v2 }
 0x15d   : > { %v2011_v12 = vmax.f32 %v848_v3, 0.0  ;;  %v2013_v13 = vmax.f32 %v856_v4, 0.0  ;;  %v846_v14 = vsub.f32 %v814_v62, %v830_v5  ;;  %v854_v15 = vsub.f32 %v822_v63, %v838_v6 }
 0x15e   : > { %v833_v18 = vmul.f32 2.0, %v1363_v9  ;;  %v841_v19 = vmul.f32 2.0, %v1371_v10  ;;  %v648_v20 = vpop.f32.mrf.mxu0  ;;  %v680_v21 = vpop.f32.mrf.mxu1 }
 0x15f   : > { %v2017_v22 = vmax.f32 %v846_v14, 0.0  ;;  %v2019_v23 = vmax.f32 %v854_v15, 0.0  ;;  %v831_v24 = vmul.f32 2.0, %v648_v20  ;;  %v839_v25 = vmul.f32 2.0, %v680_v21 }
 0x160   : > { %v849_v28 = vsub.f32 %v817_v7, %v833_v18  ;;  %v857_v29 = vsub.f32 %v825_v17, %v841_v19  ;;  %v1366_v30 = vpop.f32.mrf.mxu0  ;;  %v1374_v31 = vpop.f32.mrf.mxu1 }
 0x161   : > { %v847_v33 = vsub.f32 %v815_v8, %v831_v24  ;;  %v855_v34 = vsub.f32 %v823_v16, %v839_v25  ;;  %v836_v35 = vmul.f32 2.0, %v1366_v30  ;;  %v844_v36 = vmul.f32 2.0, %v1374_v31 }
 0x162   : > { %v2025_v39 = vmax.f32 %v849_v28, 0.0  ;;  %v2027_v40 = vmax.f32 %v857_v29, 0.0  ;;  %v661_v41 = vpop.f32.mrf.mxu0  ;;  %v693_v42 = vpop.f32.mrf.mxu1 }
 0x163   : > { %v2029_v43 = vmax.f32 %v847_v33, 0.0  ;;  %v2031_v44 = vmax.f32 %v855_v34, 0.0  ;;  %v852_v45 = vsub.f32 %v820_v26, %v836_v35  ;;  %v860_v48 = vsub.f32 %v828_v27, %v844_v36 }
 0x164   : > { %v834_v52 = vmul.f32 2.0, %v661_v41  ;;  %v842_v46 = vmul.f32 2.0, %v693_v42  ;;  %v1367_v53 = vpop.f32.mrf.mxu0  ;;  %v1375_v49 = vpop.f32.mrf.mxu1 }
 0x165   : > { %v2035_v56 = vmax.f32 %v852_v45, 0.0  ;;  %v2037_v57 = vmax.f32 %v860_v48, 0.0  ;;  %v837_v58 = vmul.f32 2.0, %v1367_v53  ;;  %v845_v59 = vmul.f32 2.0, %v1375_v49 }
 0x166   : > { %v850_v62 = vsub.f32 %v818_v37, %v834_v52  ;;  %v858_v63 = vsub.f32 %v826_v50, %v842_v46  ;;  %v664_v55 = vpop.f32.mrf.mxu0  ;;  %v696_v0 = vpop.f32.mrf.mxu1 }
 0x167   : > { %v853_v1 = vsub.f32 %v821_v38, %v837_v58  ;;  %v861_v3 = vsub.f32 %v829_v51, %v845_v59  ;;  %v835_v4 = vmul.f32 2.0, %v664_v55  ;;  %v843_v5 = vmul.f32 2.0, %v696_v0  ;;  %882 = sbr.rel (%p1321_p5) target bundleno = 436 (0x1b4), region = 48 }
 0x168   : > { %v2042_v6 = vmax.f32 %v850_v62, 0.0  ;;  %v2044_v7 = vmax.f32 %v858_v63, 0.0 }
 0x169   : > { %v2046_v8 = vmax.f32 %v853_v1, 0.0  ;;  %v2048_v9 = vmax.f32 %v861_v3, 0.0  ;;  %v851_v10 = vsub.f32 %v819_v60, %v835_v4  ;;  %v859_v47 = vsub.f32 %v827_v61, %v843_v5 }
 0x16b   : > { %v2050_v11 = vmax.f32 %v851_v10, 0.0  ;;  %v2052_v54 = vmax.f32 %v859_v47, 0.0 }
 0x16c   : > { %v883_v2 = vlaneseq }
 0x16e   : > { %v2056_v14 = vshrl.u32 %v883_v2, 7  ;;  %v2058_v15 = vand.u32 127, %v883_v2 }
 0x170   : > { %v2061_v16 = vadd.s32 8, %v2056_v14  ;;  %v2064_v17 = vadd.s32 16, %v2056_v14  ;;  %v2067_v18 = vadd.s32 24, %v2056_v14  ;;  %v2070_v19 = vadd.s32 32, %v2056_v14 }
 0x171   : > { %vm902_vm1 = vcmp.gt.s32.totalorder %v2058_v15, %v2056_v14  ;;  %v2075_v20 = vadd.s32 40, %v2056_v14  ;;  %v2080_v21 = vadd.s32 48, %v2056_v14  ;;  %v2085_v24 = vadd.s32 56, %v2056_v14 }
 0x172   : > { %vm903_vm2 = vcmp.gt.s32.totalorder %v2058_v15, %v2061_v16  ;;  %vm904_vm3 = vcmp.gt.s32.totalorder %v2058_v15, %v2064_v17  ;;  %vm905_vm4 = vcmp.gt.s32.totalorder %v2058_v15, %v2067_v18  ;;  %v918_v25 = vsel %vm902_vm1, %v2017_v22, 1.0 }
 0x173   : > { %vm906_vm5 = vcmp.gt.s32.totalorder %v2058_v15, %v2070_v19  ;;  %v919_v26 = vsel %vm903_vm2, %v2029_v43, 1.0  ;;  %vm907_vm6 = vcmp.gt.s32.totalorder %v2058_v15, %v2075_v20  ;;  %v920_v27 = vsel %vm904_vm3, %v2011_v12, 1.0 }
 0x174   : > { %vm908_vm7 = vcmp.gt.s32.totalorder %v2058_v15, %v2080_v21  ;;  %v921_v28 = vsel %vm905_vm4, %v2025_v39, 1.0  ;;  %v934_v29 = vsub.f32 0.0, %v918_v25  ;;  %vm909_vm8 = vcmp.gt.s32.totalorder %v2058_v15, %v2085_v24 }
 0x175   : > { %v922_v30 = vsel %vm906_vm5, %v2042_v6, 1.0  ;;  %v935_v31 = vsub.f32 0.0, %v919_v26  ;;  %v923_v32 = vsel %vm907_vm6, %v2050_v11, 1.0  ;;  %v936_v33 = vsub.f32 0.0, %v920_v27 }
 0x176   : > { %v924_v34 = vsel %vm908_vm7, %v2035_v56, 1.0  ;;  %v937_v35 = vsub.f32 0.0, %v921_v28  ;;  %v925_v36 = vsel %vm909_vm8, %v2046_v8, 1.0  ;;  %v938_v37 = vsub.f32 0.0, %v922_v30 }
 0x177   : > { %v950_v38 = vmul.f32 1.442695, %v934_v29  ;;  %v2130_v41 = vadd.s32 64, %v2056_v14  ;;  %v939_v42 = vsub.f32 0.0, %v923_v32  ;;  %v952_v45 = vmul.f32 1.442695, %v935_v31 }
 0x178   : > { %v940_v48 = vsub.f32 0.0, %v924_v34  ;;  %v954_v50 = vmul.f32 1.442695, %v936_v33  ;;  %v2133_v51 = vadd.s32 72, %v2056_v14  ;;  %v941_v52 = vsub.f32 0.0, %v925_v36 }
 0x179   : > { %v956_v46 = vmul.f32 1.442695, %v937_v35  ;;  %1504 = vrcp.f32 %v918_v25  ;;  %v958_v53 = vmul.f32 1.442695, %v938_v37  ;;  %v2136_v49 = vadd.s32 80, %v2056_v14 }
 0x17a   : > { %1506 = vpow2.f32 %v950_v38  ;;  %vm910_vm9 = vcmp.gt.s32.totalorder %v2058_v15, %v2130_v41  ;;  %v960_v58 = vmul.f32 1.442695, %v939_v42  ;;  %v962_v59 = vmul.f32 1.442695, %v940_v48 }
 0x17b   : > { %1508 = vpow2.f32 %v952_v45  ;;  %v2141_v60 = vadd.s32 88, %v2056_v14  ;;  %vm911_vm10 = vcmp.gt.s32.totalorder %v2058_v15, %v2133_v51  ;;  %v964_v61 = vmul.f32 1.442695, %v941_v52 }
 0x17c   : > { %1510 = vpow2.f32 %v954_v50  ;;  %v926_v62 = vsel %vm910_vm9, %v2019_v23, 1.0  ;;  %v2150_v63 = vadd.s32 96, %v2056_v14  ;;  %vm912_vm11 = vcmp.gt.s32.totalorder %v2058_v15, %v2136_v49 }
 0x17d   : > { %1512 = vpow2.f32 %v956_v46  ;;  %v927_v55 = vsel %vm911_vm10, %v2031_v44, 1.0  ;;  %v2159_v0 = vadd.s32 104, %v2056_v14  ;;  %vm913_vm12 = vcmp.gt.s32.totalorder %v2058_v15, %v2141_v60 }
 0x17e   : > { %1514 = vpow2.f32 %v958_v53  ;;  %v942_v1 = vsub.f32 0.0, %v926_v62  ;;  %v928_v3 = vsel %vm912_vm11, %v2013_v13, 1.0  ;;  %v2168_v4 = vadd.s32 112, %v2056_v14 }
 0x17f   : > { %1516 = vpow2.f32 %v960_v58  ;;  %vm914_vm13 = vcmp.gt.s32.totalorder %v2058_v15, %v2150_v63  ;;  %v943_v5 = vsub.f32 0.0, %v927_v55  ;;  %v2173_v10 = vadd.s32 120, %v2056_v14 }
 0x180   : > { %1518 = vpow2.f32 %v962_v59  ;;  %v929_v47 = vsel %vm913_vm12, %v2027_v40, 1.0  ;;  %vm915_vm14 = vcmp.gt.s32.totalorder %v2058_v15, %v2159_v0  ;;  %v944_v2 = vsub.f32 0.0, %v928_v3 }
 0x181   : > { %1520 = vpow2.f32 %v964_v61  ;;  %v966_v25 = vmul.f32 1.442695, %v942_v1  ;;  %vm916_vm15 = vcmp.gt.s32.totalorder %v2058_v15, %v2168_v4  ;;  %v945_v31 = vsub.f32 0.0, %v929_v47 }
 0x182   : > { %1522 = vrcp.f32 %v919_v26  ;;  %v968_v33 = vmul.f32 1.442695, %v943_v5  ;;  %vm917_vm0 = vcmp.gt.s32.totalorder %v2058_v15, %v2173_v10 }
 0x183   : > { %1524 = vrcp.f32 %v920_v27  ;;  %v930_v27 = vsel %vm914_vm13, %v2044_v7, 1.0  ;;  %v933_v45 = vsel %vm917_vm0, %v2048_v9, 1.0 }
 0x184   : > { %1526 = vrcp.f32 %v921_v28  ;;  %v946_v37 = vsub.f32 0.0, %v930_v27  ;;  %v949_v61 = vsub.f32 0.0, %v933_v45 }
 0x185   : > { %1528 = vrcp.f32 %v922_v30  ;;  %v931_v30 = vsel %vm915_vm14, %v2052_v54, 1.0 }
 0x186   : > { %v1505_v26 = vpop.eup %1504  ;;  %1530 = vrcp.f32 %v923_v32  ;;  %v970_v32 = vmul.f32 1.442695, %v944_v2  ;;  %v947_v48 = vsub.f32 0.0, %v931_v30  ;;  %v974_v58 = vmul.f32 1.442695, %v946_v37 }
 0x187   : > { %v1507_v29 = vpop.eup %1506  ;;  %1532 = vrcp.f32 %v924_v34  ;;  %v932_v34 = vsel %vm916_vm15, %v2037_v57, 1.0 }
 0x188   : > { %v1509_v28 = vpop.eup %1508  ;;  %1534 = vrcp.f32 %v925_v36  ;;  %v972_v36 = vmul.f32 1.442695, %v945_v31  ;;  %v998_v52 = vmul.f32 %v1507_v29, %v1505_v26  ;;  %v948_v53 = vsub.f32 0.0, %v932_v34 }
 0x189   : > { %v1511_v35 = vpop.eup %1510  ;;  %1536 = vpow2.f32 %v966_v25  ;;  %v976_v1 = vmul.f32 1.442695, %v947_v48 }
 0x18a   : > { %v1513_v38 = vpop.eup %1512  ;;  %1538 = vrcp.f32 %v926_v62  ;;  %v1014_v25 = vsel %vm902_vm1, %v998_v52, 0.0 }
 0x18b   : > { %v1515_v42 = vpop.eup %1514  ;;  %1540 = vpow2.f32 %v968_v33  ;;  %v980_v33 = vmul.f32 1.442695, %v949_v61 }
 0x18c   : > { %v1517_v50 = vpop.eup %1516  ;;  %1542 = vrcp.f32 %v927_v55  ;;  %v978_v55 = vmul.f32 1.442695, %v948_v53 }
 0x18d   : > { %v1519_v46 = vpop.eup %1518  ;;  %1544 = vpow2.f32 %v970_v32 }
 0x18e   : > { %v1521_v59 = vpop.eup %1520  ;;  %1546 = vrcp.f32 %v928_v3 }
 0x18f   : > { %v1523_v62 = vpop.eup %1522  ;;  %1548 = vpow2.f32 %v972_v36 }
 0x190   : > { %v1525_v5 = vpop.eup %1524  ;;  %1550 = vrcp.f32 %v929_v47  ;;  %v999_v2 = vmul.f32 %v1523_v62, %v1509_v28 }
 0x191   : > { %v1527_v31 = vpop.eup %1526  ;;  %1552 = vpow2.f32 %v974_v58  ;;  %v1000_v26 = vmul.f32 %v1525_v5, %v1511_v35 }
 0x192   : > { %v1529_v29 = vpop.eup %1528  ;;  %1554 = vrcp.f32 %v930_v27  ;;  %v1001_v37 = vmul.f32 %v1527_v31, %v1513_v38  ;;  %v1015_v3 = vsel %vm903_vm2, %v999_v2, 0.0 }
 0x193   : > { %v1531_v32 = vpop.eup %1530  ;;  %1556 = vpow2.f32 %v976_v1  ;;  %v1002_v47 = vmul.f32 %v1529_v29, %v1515_v42  ;;  %v1016_v14 = vsel %vm904_vm3, %v1000_v26, 0.0  ;;  %v1031_v28 = vadd.f32 %v1015_v3, %v1014_v25 }
 0x194   : > { %v1533_v48 = vpop.eup %1532  ;;  %1558 = vrcp.f32 %v931_v30  ;;  %v1003_v36 = vmul.f32 %v1531_v32, %v1517_v50  ;;  %v1017_v27 = vsel %vm905_vm4, %v1001_v37, 0.0 }
 0x195   : > { %v1535_v35 = vpop.eup %1534  ;;  %1560 = vpow2.f32 %v978_v55  ;;  %v1032_v38 = vadd.f32 %v1031_v28, %v1016_v14  ;;  %v1004_v52 = vmul.f32 %v1533_v48, %v1519_v46  ;;  %v1018_v42 = vsel %vm906_vm5, %v1002_v47, 0.0 }
 0x196   : > { %v1537_v16 = vpop.eup %1536  ;;  %1562 = vrcp.f32 %v932_v34  ;;  %v1005_v30 = vmul.f32 %v1535_v35, %v1521_v59  ;;  %v1019_v18 = vsel %vm907_vm6, %v1003_v36, 0.0 }
 0x197   : > { %v1539_v17 = vpop.eup %1538  ;;  %1564 = vpow2.f32 %v980_v33  ;;  %v1033_v53 = vadd.f32 %v1032_v38, %v1017_v27  ;;  %v1020_v34 = vsel %vm908_vm7, %v1004_v52, 0.0 }
 0x198   : > { %v1541_v58 = vpop.eup %1540  ;;  %1566 = vrcp.f32 %v933_v45  ;;  %v1006_v1 = vmul.f32 %v1539_v17, %v1537_v16  ;;  %v1021_v45 = vsel %vm909_vm8, %v1005_v30, 0.0 }
 0x199   : > { %v1543_v50 = vpop.eup %1542  ;;  %v1034_v61 = vadd.f32 %v1033_v53, %v1018_v42 }
 0x19a   : > { %v1545_v62 = vpop.eup %1544  ;;  %v1007_v2 = vmul.f32 %v1543_v50, %v1541_v58  ;;  %v1022_v55 = vsel %vm910_vm9, %v1006_v1, 0.0 }
 0x19b   : > { %v1547_v19 = vpop.eup %1546  ;;  %v1035_v46 = vadd.f32 %v1034_v61, %v1019_v18  ;;  %v1030_v18 = vld [vmem:[#allocation2] sm:$0xff] }
 0x19c   : > { %v1549_v5 = vpop.eup %1548  ;;  %v1008_v31 = vmul.f32 %v1547_v19, %v1545_v62  ;;  %v1023_v37 = vsel %vm911_vm10, %v1007_v2, 0.0 }
 0x19d   : > { %v1551_v59 = vpop.eup %1550  ;;  %v1036_v25 = vadd.f32 %v1035_v46, %v1020_v34 }
 0x19e   : > { %v1553_v20 = vpop.eup %1552  ;;  %v1009_v33 = vmul.f32 %v1551_v59, %v1549_v5  ;;  %v1024_v14 = vsel %vm912_vm11, %v1008_v31, 0.0 }
 0x19f   : > { %v1555_v26 = vpop.eup %1554  ;;  %v1037_v29 = vadd.f32 %v1036_v25, %v1021_v45 }
 0x1a0   : > { %v1557_v21 = vpop.eup %1556  ;;  %v1010_v47 = vmul.f32 %v1555_v26, %v1553_v20  ;;  %v1025_v27 = vsel %vm913_vm12, %v1009_v33, 0.0 }
 0x1a1   : > { %v1559_v3 = vpop.eup %1558  ;;  %v1038_v32 = vadd.f32 %v1037_v29, %v1022_v55 }
 0x1a2   : > { %v1561_v24 = vpop.eup %1560  ;;  %v1011_v36 = vmul.f32 %v1559_v3, %v1557_v21  ;;  %v1026_v16 = vsel %vm914_vm13, %v1010_v47, 0.0 }
 0x1a3   : > { %v1563_v28 = vpop.eup %1562  ;;  %v1039_v48 = vadd.f32 %v1038_v32, %v1023_v37 }
 0x1a4   : > { %v1565_v41 = vpop.eup %1564  ;;  %v1012_v51 = vmul.f32 %v1563_v28, %v1561_v24  ;;  %v1027_v49 = vsel %vm915_vm14, %v1011_v36, 0.0 }
 0x1a5   : > { %v1567_v35 = vpop.eup %1566  ;;  %v1040_v38 = vadd.f32 %v1039_v48, %v1024_v14 }
 0x1a6   : > { %v1013_v42 = vmul.f32 %v1567_v35, %v1565_v41  ;;  %v1028_v53 = vsel %vm916_vm15, %v1012_v51, 0.0 }
 0x1a7   : > { %v1041_v52 = vadd.f32 %v1040_v38, %v1025_v27 }
 0x1a8   : > { %v1029_v58 = vsel %vm917_vm0, %v1013_v42, 0.0 }
 0x1a9   : > { %v1042_v17 = vadd.f32 %v1041_v52, %v1026_v16 }
 0x1ab   : > { %v1043_v60 = vadd.f32 %v1042_v17, %v1027_v49 }
 0x1ad   : > { %v1044_v30 = vadd.f32 %v1043_v60, %v1028_v53 }
 0x1af   : > { %v1045_v63 = vadd.f32 %v1044_v30, %v1029_v58 }
 0x1b1   : > { %v1046_v50 = vadd.f32 %v1045_v63, %v1030_v18 }
 0x1b3   : > { %1047 = vst [vmem:[#allocation2] sm:$0xff] %v1046_v50 }
 0x1b4 PF: > { %p1322_p6 = scmp.eq.s32.totalorder %s1933_s30, %s1994_s23 }
 0x1b6   : > { %1051 = sbr.rel (%p1322_p6) target bundleno = 501 (0x1f5), region = 52 }
 0x1bb   : > { %v1053_v0 = vsub.f32 0.0, %v2017_v22  ;;  %v1054_v4 = vsub.f32 0.0, %v2029_v43  ;;  %v1055_v61 = vsub.f32 0.0, %v2011_v12  ;;  %v1056_v15 = vsub.f32 0.0, %v2025_v39 }
 0x1bc   : > { %v1057_v1 = vsub.f32 0.0, %v2042_v6  ;;  %1568 = vrcp.f32 %v2017_v22  ;;  %v1058_v34 = vsub.f32 0.0, %v2050_v11  ;;  %v1059_v19 = vsub.f32 0.0, %v2035_v56 }
 0x1bd   : > { %v1069_v62 = vmul.f32 1.442695, %v1053_v0  ;;  %v1071_v10 = vmul.f32 1.442695, %v1054_v4  ;;  %1570 = vrcp.f32 %v2029_v43  ;;  %v1073_v46 = vmul.f32 1.442695, %v1055_v61 }
 0x1be   : > { %v1075_v5 = vmul.f32 1.442695, %v1056_v15  ;;  %v1077_v2 = vmul.f32 1.442695, %v1057_v1  ;;  %v1079_v45 = vmul.f32 1.442695, %v1058_v34 }
 0x1bf   : > { %1572 = vpow2.f32 %v1069_v62  ;;  %v1081_v59 = vmul.f32 1.442695, %v1059_v19  ;;  %v1060_v25 = vsub.f32 0.0, %v2046_v8  ;;  %v1061_v22 = vsub.f32 0.0, %v2019_v23 }
 0x1c0   : > { %1574 = vpow2.f32 %v1071_v10  ;;  %v1062_v43 = vsub.f32 0.0, %v2031_v44  ;;  %v1063_v26 = vsub.f32 0.0, %v2013_v13  ;;  %v1066_v47 = vsub.f32 0.0, %v2052_v54 }
 0x1c1   : > { %1576 = vpow2.f32 %v1073_v46  ;;  %v1083_v20 = vmul.f32 1.442695, %v1060_v25  ;;  %v1085_v29 = vmul.f32 1.442695, %v1061_v22  ;;  %v1068_v27 = vsub.f32 0.0, %v2048_v9 }
 0x1c2   : > { %1578 = vpow2.f32 %v1075_v5  ;;  %v1087_v37 = vmul.f32 1.442695, %v1062_v43  ;;  %v1095_v35 = vmul.f32 1.442695, %v1066_v47 }
 0x1c3   : > { %1580 = vpow2.f32 %v1077_v2  ;;  %v1099_v53 = vmul.f32 1.442695, %v1068_v27 }
 0x1c4   : > { %1582 = vpow2.f32 %v1079_v45 }
 0x1c5   : > { %1584 = vpow2.f32 %v1081_v59 }
 0x1c6   : > { %1586 = vrcp.f32 %v2011_v12  ;;  %v1064_v12 = vsub.f32 0.0, %v2027_v40 }
 0x1c7   : > { %1588 = vrcp.f32 %v2025_v39  ;;  %v1065_v39 = vsub.f32 0.0, %v2044_v7 }
 0x1c8   : > { %1590 = vrcp.f32 %v2042_v6  ;;  %v1089_v6 = vmul.f32 1.442695, %v1063_v26 }
 0x1c9   : > { %v1569_v31 = vpop.eup %1568  ;;  %1592 = vrcp.f32 %v2050_v11  ;;  %v1093_v48 = vmul.f32 1.442695, %v1065_v39 }
 0x1ca   : > { %v1571_v55 = vpop.eup %1570  ;;  %1594 = vrcp.f32 %v2035_v56  ;;  %v1091_v56 = vmul.f32 1.442695, %v1064_v12 }
 0x1cb   : > { %1596 = vpow2.f32 %v1083_v20 }
 0x1cc   : > { %v1573_v21 = vpop.eup %1572  ;;  %1598 = vrcp.f32 %v2046_v8  ;;  %v1067_v8 = vsub.f32 0.0, %v2037_v57 }
 0x1cd   : > { %v1575_v33 = vpop.eup %1574  ;;  %1600 = vpow2.f32 %v1085_v29  ;;  %v1117_v32 = vmul.f32 %v1573_v21, %v1569_v31 }
 0x1ce   : > { %v1577_v3 = vpop.eup %1576  ;;  %1602 = vrcp.f32 %v2019_v23  ;;  %v1118_v24 = vmul.f32 %v1575_v33, %v1571_v55 }
 0x1cf   : > { %v1579_v11 = vpop.eup %1578  ;;  %1604 = vpow2.f32 %v1087_v37 }
 0x1d0   : > { %v1581_v14 = vpop.eup %1580  ;;  %1606 = vrcp.f32 %v2031_v44  ;;  %v1133_v36 = vadd.f32 %v1118_v24, %v1117_v32  ;;  %v1097_v44 = vmul.f32 1.442695, %v1067_v8  ;;  %v1052_v24 = vld [vmem:[#allocation2] sm:$0xff] }
 0x1d1   : > { %v1583_v28 = vpop.eup %1582  ;;  %1608 = vpow2.f32 %v1089_v6 }
 0x1d2   : > { %v1585_v41 = vpop.eup %1584  ;;  %1610 = vrcp.f32 %v2013_v13 }
 0x1d3   : > { %v1587_v23 = vpop.eup %1586  ;;  %1612 = vpow2.f32 %v1091_v56 }
 0x1d4   : > { %v1589_v38 = vpop.eup %1588  ;;  %1614 = vrcp.f32 %v2027_v40  ;;  %v1119_v51 = vmul.f32 %v1587_v23, %v1577_v3 }
 0x1d5   : > { %v1591_v16 = vpop.eup %1590  ;;  %1616 = vpow2.f32 %v1093_v48  ;;  %v1120_v52 = vmul.f32 %v1589_v38, %v1579_v11 }
 0x1d6   : > { %v1593_v42 = vpop.eup %1592  ;;  %1618 = vrcp.f32 %v2044_v7  ;;  %v1121_v49 = vmul.f32 %v1591_v16, %v1581_v14  ;;  %v1134_v17 = vadd.f32 %v1133_v36, %v1119_v51 }
 0x1d7   : > { %v1595_v13 = vpop.eup %1594  ;;  %1620 = vpow2.f32 %v1095_v35  ;;  %v1122_v58 = vmul.f32 %v1593_v42, %v1583_v28 }
 0x1d8   : > { %v1597_v60 = vpop.eup %1596  ;;  %1622 = vrcp.f32 %v2052_v54  ;;  %v1135_v30 = vadd.f32 %v1134_v17, %v1120_v52  ;;  %v1123_v63 = vmul.f32 %v1595_v13, %v1585_v41 }
 0x1d9   : > { %v1599_v18 = vpop.eup %1598  ;;  %1624 = vpow2.f32 %v1097_v44 }
 0x1da   : > { %v1601_v40 = vpop.eup %1600  ;;  %1626 = vrcp.f32 %v2037_v57  ;;  %v1136_v50 = vadd.f32 %v1135_v30, %v1121_v49  ;;  %v1124_v4 = vmul.f32 %v1599_v18, %v1597_v60 }
 0x1db   : > { %v1603_v0 = vpop.eup %1602  ;;  %1628 = vpow2.f32 %v1099_v53 }
 0x1dc   : > { %v1605_v7 = vpop.eup %1604  ;;  %1630 = vrcp.f32 %v2048_v9  ;;  %v1137_v61 = vadd.f32 %v1136_v50, %v1122_v58  ;;  %v1125_v10 = vmul.f32 %v1603_v0, %v1601_v40 }
 0x1dd   : > { %v1607_v62 = vpop.eup %1606 }
 0x1de   : > { %v1609_v15 = vpop.eup %1608  ;;  %v1138_v54 = vadd.f32 %v1137_v61, %v1123_v63  ;;  %v1126_v19 = vmul.f32 %v1607_v62, %v1605_v7 }
 0x1df   : > { %v1611_v1 = vpop.eup %1610 }
 0x1e0   : > { %v1613_v34 = vpop.eup %1612  ;;  %v1139_v46 = vadd.f32 %v1138_v54, %v1124_v4  ;;  %v1127_v57 = vmul.f32 %v1611_v1, %v1609_v15 }
 0x1e1   : > { %v1615_v5 = vpop.eup %1614 }
 0x1e2   : > { %v1617_v2 = vpop.eup %1616  ;;  %v1140_v45 = vadd.f32 %v1139_v46, %v1125_v10  ;;  %v1128_v22 = vmul.f32 %v1615_v5, %v1613_v34 }
 0x1e3   : > { %v1619_v59 = vpop.eup %1618 }
 0x1e4   : > { %v1621_v25 = vpop.eup %1620  ;;  %v1141_v43 = vadd.f32 %v1140_v45, %v1126_v19  ;;  %v1129_v31 = vmul.f32 %v1619_v59, %v1617_v2 }
 0x1e5   : > { %v1623_v20 = vpop.eup %1622 }
 0x1e6   : > { %v1625_v9 = vpop.eup %1624  ;;  %v1142_v55 = vadd.f32 %v1141_v43, %v1127_v57  ;;  %v1130_v21 = vmul.f32 %v1623_v20, %v1621_v25 }
 0x1e7   : > { %v1627_v26 = vpop.eup %1626 }
 0x1e8   : > { %v1629_v29 = vpop.eup %1628  ;;  %v1143_v33 = vadd.f32 %v1142_v55, %v1128_v22  ;;  %v1131_v37 = vmul.f32 %v1627_v26, %v1625_v9 }
 0x1e9   : > { %v1631_v12 = vpop.eup %1630 }
 0x1ea   : > { %v1144_v39 = vadd.f32 %v1143_v33, %v1129_v31  ;;  %v1132_v6 = vmul.f32 %v1631_v12, %v1629_v29 }
 0x1ec   : > { %v1145_v3 = vadd.f32 %v1144_v39, %v1130_v21 }
 0x1ee   : > { %v1146_v32 = vadd.f32 %v1145_v3, %v1131_v37 }
 0x1f0   : > { %v1147_v11 = vadd.f32 %v1146_v32, %v1132_v6 }
 0x1f2   : > { %v1148_v47 = vadd.f32 %v1147_v11, %v1052_v24 }
 0x1f4   : > { %1149 = vst [vmem:[#allocation2] sm:$0xff] %v1148_v47 }
 0x1f5 PF: > { %p1323_p7 = scmp.ne.s32.totalorder %s1746_s16, 2 }
 0x1f7   : > { %1153 = sbr.rel (%p1323_p7) target bundleno = 711 (0x2c7), region = 56 }
 0x1fc   : > { %v1154_v56 = vld [vmem:[#allocation2] sm:$0xff] }
 0x1fd   : > { %1155 = vadd.xlane.f32.xlu0 %v1154_v56 }
 0x286   : > { %v1156_v14 = vpop.xlane.xlu0 %1155 }
 0x287   : > { %v1157_v28 = vrot.slane %v1156_v14, 4 }
 0x289   : > { %v1158_v8 = vadd.f32 %v1157_v28, %v1156_v14 }
 0x28b   : > { %v1159_v48 = vrot.slane %v1158_v8, 2 }
 0x28d   : > { %v1160_v41 = vadd.f32 %v1159_v48, %v1158_v8 }
 0x28f   : > { %v1161_v36 = vrot.slane %v1160_v41, 1 }
 0x291   : > { %v1162_v23 = vadd.f32 %v1161_v36, %v1160_v41 }
 0x293   : > { %1408 = vpush %v1162_v23 }
 0x2c4   : > { %s1409_s19 = spop %1408 }
 0x2c5   : > { %v1164_v27 = vstv %s1409_s19 }
 0x2c6   : > { %1165 = vst [vmem:[%s1915_s18] sm:$0xff] %v1164_v27 }
 0x2c7 PF: > { %s1325_s16 = sshll.u32 %s1750_s17, 7  ;;  %s1180_s10 = sshll.u32 %s1915_s18, 4  ;;  %s1181_s10 = int_to_ptr.vmem [resolvable:$true] %s1180_s10 }
 0x2c8   : > { %s1178_s1 = scalar_lea.hbm %s2337_s7, %s1325_s16  ;;  %s2350_s12 = sand.u32 1, %s1738_s15  }
 0x2c9   : > { %s1167_s13 = scalar_lea.sflag [#allocation8], %s2350_s12  ;;  %s1668_s24 = scalar_lea.vmem %s1181_s10, 128 }
 0x2ca   : > { %p1669_p8 = scmp.ne.s32.totalorder %s1181_s10, %s1668_s24  ;;  %s1769_s30 = smov [#allocation7]  }
 0x2cb   : > { %s1672_s9 = sshll.u32 %s1769_s30, 4  ;;  %s1673_s9 = int_to_ptr.vmem [resolvable:$false] %s1672_s9 }
 0x2cc   : > { %p1670_p9 = pnand %p1669_p8, %p1868_p4  ;;  %s1674_s22 = scalar_lea.vmem %s1673_s9, 256 }
 0x2cd   : > { %p1675_p12 = scmp.lt.s32.totalorder %s1181_s10, %s1673_s9  ;;  %p1676_p13 = scmp.lt.s32.totalorder %s1674_s22, %s1668_s24 }
 0x2ce   : > { %p1671_p11 = pneg %p1670_p9 }
 0x2cf   : > { %p1677_p0 = por %p1676_p13, %p1675_p12 }
 0x2d1   : > { %p1678_p1 = pnand %p1677_p0, %p1671_p11 }
 0x2d3   : > { %1681 = shalt.err (!%p1678_p1)
}
 0x2d4   : > { %s1682_s17 = scalar_lea.hbm %s1178_s1, 128  ;;  %s1686_s28 = scalar_lea.hbm %s2337_s7, 256 }
 0x2d5   : > { %p1683_p2 = scmp.ne.s32.totalorder %s1178_s1, %s1682_s17  ;;  %p1687_p6 = scmp.lt.s32.totalorder %s1178_s1, %s2337_s7 }
 0x2d6   : > { %p1688_p7 = scmp.lt.s32.totalorder %s1686_s28, %s1682_s17 }
 0x2d7   : > { %p1684_p3 = pnand %p1683_p2, %p1868_p4 }
 0x2d8   : > { %p1689_p8 = por %p1688_p7, %p1687_p6 }
 0x2d9   : > { %p1685_p5 = pneg %p1684_p3 }
 0x2db   : > { %p1690_p9 = pnand %p1689_p8, %p1685_p5 }
 0x2dd   : > { %1693 = shalt.err (!%p1690_p9)
}
 0x2de   : > { %1410 = dma.vmem_to_hbm [thread:$0]  (%p1868_p4), %s1181_s10, 128, %s1178_s1, %s1167_s13  }
 0x2df PF: > { %p1416_p11 = scmp.ge.s32.totalorder %s1762_s20, 2  ;;  %s1192_s0 = sand.u32 1, %s1734_s14  }
 0x2e0   : > { %s1193_s19 = scalar_lea.sflag [#allocation8], %s1192_s0 }
 0x2e1   : > { %p1413_p12 = pnand %p1416_p11, %p1878_p10 }
 0x2e3   : > { %p1414_p13 = pneg %p1413_p12 }
 0x2e5   : > { %1729 = dma.done.wait (%p1414_p13), %s1193_s19, 128  }
 0x2e6   : > { %1731 = vsyncadd (%p1414_p13), %s1193_s19, 4294967168  ;;  %s34_s20 = sadd.s32 1, %s1762_s20   ;;  %s2351_s16 = sld [smem:[#allocation11_spill]] }
 0x2e7   : > { %p31_p0 = scmp.ge.s32.totalorder %s34_s20, 8   ;;  %s2352_s17 = sld [smem:[#allocation12_spill]] }
 0x2e8   : > { %s2353_s18 = sld [smem:[#allocation13_spill]]  ;;  %s2355_s14 = smov %s1738_s15 }
 0x2e9   : > { %s2354_s19 = sld [smem:[#allocation14_spill]]  ;;  %s2356_s15 = smov %s1742_s2 }
 0x2ea   : > { %s2357_s2 = smov %s1886_s29  ;;  %33 = sbr.rel (!%p31_p0) target bundleno = 40 (0x28), region = 98 }
 0x2ef   :  { %1198 = vsyncpa [#allocation8], 1 }
 0x2f0   :  { %1200 = vsyncpa [#allocation8 + $0x1], 1 }

</bundles_post_ra>
